<compile_context>
chip_gen: v7x
topology: tpu7x:2x2x1
jax: 0.10.0
libtpu: 0.0.40
codegen_flags: <defaults>
</compile_context>

<pallas_src>
import functools

import jax
import jax.numpy as jnp
from jax.experimental import pallas as pl
from jax.experimental.pallas import tpu as pltpu


def gru_decode_kernel(tok_ref,        # SMEM (Tpad,) int32  scalar-prefetched token ids
                      emb_ref,        # VMEM (V, 1, Ep) bf16 resident embedding table
                      h0_ref,         # VMEM (1, Hp)  f32   initial hidden state (padded)
                      wg_ref,         # VMEM (Ep+Hp, 4Hp) bf16 stacked gate weights
                      bg_ref,         # VMEM (1, 4Hp) f32   [r_sum | z_sum | b_in | b_hn]
                      wo_ref,         # VMEM (Hp, Dp) bf16  output projection
                      bo_ref,         # VMEM (1, Dp)  f32   output bias (pads = -1e30)
                      logp_ref,       # out  (Tb, Dp) f32   log_softmax rows for this block
                      hlast_ref,      # out  (1, Hp)  f32   final hidden state
                      h_carry,        # VMEM (1, Hp)  f32   hidden-state carry across blocks
                      *, seq_len):
    b = pl.program_id(0)
    tb = logp_ref.shape[0]
    hp = h_carry.shape[-1]

    @pl.when(b == 0)
    def _():
        h_carry[...] = h0_ref[...]

    # Upcast the resident bf16 gate weights to f32 ONCE per time-block (not per step).
    wg = wg_ref[...].astype(jnp.float32)          # (Ep+Hp, 4Hp)
    bg = bg_ref[...]                              # (1, 4Hp)

    h = h_carry[...]                              # (1, Hp) f32
    rows = []
    # Static unroll: Tb is small and the recurrence is inherently serial.
    for i in range(tb):
        tok = tok_ref[b * tb + i]                 # SMEM scalar read (dynamic index)
        x = emb_ref[tok].astype(jnp.float32)      # (1, Ep) gather from resident table
        xh = jnp.concatenate([x, h], axis=-1)     # (1, Ep+Hp) lane-tile aligned
        g = jnp.dot(xh, wg, preferred_element_type=jnp.float32) + bg
        r = jax.nn.sigmoid(g[:, 0 * hp:1 * hp])   # W_ir x + W_hr h + (b_ir+b_hr)
        z = jax.nn.sigmoid(g[:, 1 * hp:2 * hp])   # W_iz x + W_hz h + (b_iz+b_hz)
        n = jnp.tanh(g[:, 2 * hp:3 * hp] + r * g[:, 3 * hp:4 * hp])   # b_hn inside r*(.)
        h = (1.0 - z) * n + z * h
        rows.append(h)
    h_carry[...] = h

    @pl.when(b == pl.num_programs(0) - 1)
    def _():
        # Step T-1 always lives inside the last block (tokens are padded up to Tpad).
        hlast_ref[...] = rows[(seq_len - 1) % tb]

    # Batched vocab projection + numerically stable log_softmax over the whole block.
    hblk = jnp.concatenate(rows, axis=0)          # (Tb, Hp) f32
    logits = jnp.dot(hblk.astype(jnp.bfloat16), wo_ref[...],
                     preferred_element_type=jnp.float32) + bo_ref[...]
    m = jnp.max(logits, axis=-1, keepdims=True)
    s = logits - m                                # padded lanes: ~-1e30 -> exp() == 0
    lse = jnp.log(jnp.sum(jnp.exp(s), axis=-1, keepdims=True))
    logp_ref[...] = (s - lse).astype(logp_ref.dtype)


def _round_up(x, m):
    return ((x + m - 1) // m) * m


def pack_params(params, *, lane=128):
    """One-time repack of PyTorch-layout params into the fused/padded kernel layout."""
    emb = params["embedding"]                 # (V, E)
    w_ih = params["w_ih_t"]                   # (E, 3H)  gate order [r | z | n]
    w_hh = params["w_hh_t"]                   # (H, 3H)
    b_ih = params["b_ih"][0]                  # (3H,)
    b_hh = params["b_hh"][0]
    w_out = params["w_out_t"]                 # (H, D)
    b_out = params["b_out"][0]                # (D,)

    V, E = emb.shape
    H = w_hh.shape[0]
    D = w_out.shape[1]
    # 128-lane alignment (v5e); on v6e/v7x a 256 multiple for Dp/Tb fills the MXU better.
    Ep, Hp, Dp = _round_up(E, lane), _round_up(H, lane), _round_up(D, lane)

    # Dense stacked gate weight: rows = [x (Ep) ; h (Hp)], cols = [r_sum|z_sum|i_n|h_n].
    wg = jnp.zeros((Ep + Hp, 4 * Hp), jnp.float32)
    wg = wg.at[:E, 0 * Hp:0 * Hp + H].set(w_ih[:, 0 * H:1 * H])          # W_ir
    wg = wg.at[Ep:Ep + H, 0 * Hp:0 * Hp + H].set(w_hh[:, 0 * H:1 * H])   # W_hr
    wg = wg.at[:E, 1 * Hp:1 * Hp + H].set(w_ih[:, 1 * H:2 * H])          # W_iz
    wg = wg.at[Ep:Ep + H, 1 * Hp:1 * Hp + H].set(w_hh[:, 1 * H:2 * H])   # W_hz
    wg = wg.at[:E, 2 * Hp:2 * Hp + H].set(w_ih[:, 2 * H:3 * H])          # W_in
    wg = wg.at[Ep:Ep + H, 3 * Hp:3 * Hp + H].set(w_hh[:, 2 * H:3 * H])   # W_hn

    # Padded gate-bias lanes stay 0 so padded hidden lanes remain exactly 0 every step.
    bg = jnp.zeros((1, 4 * Hp), jnp.float32)
    bg = bg.at[0, 0 * Hp:0 * Hp + H].set(b_ih[0 * H:1 * H] + b_hh[0 * H:1 * H])  # r (pre-summed)
    bg = bg.at[0, 1 * Hp:1 * Hp + H].set(b_ih[1 * H:2 * H] + b_hh[1 * H:2 * H])  # z (pre-summed)
    bg = bg.at[0, 2 * Hp:2 * Hp + H].set(b_ih[2 * H:3 * H])                      # b_in
    bg = bg.at[0, 3 * Hp:3 * Hp + H].set(b_hh[2 * H:3 * H])                      # b_hn

    emb_p = jnp.zeros((V, 1, Ep), jnp.float32).at[:, 0, :E].set(emb)
    wo = jnp.zeros((Hp, Dp), jnp.float32).at[:H, :D].set(w_out)
    bo = jnp.full((1, Dp), -1e30, jnp.float32).at[0, :D].set(b_out)   # f32: no bf16 -inf

    return {
        "emb": emb_p.astype(jnp.bfloat16),    # resident VMEM table, in-kernel row gather
        "wg": wg.astype(jnp.bfloat16),
        "bg": bg,                             # biases stay f32
        "wo": wo.astype(jnp.bfloat16),
        "bo": bo,
    }


def gru_decode(packed, tokens, last_hidden, *, dict_size, block_tokens=8):
    """Run the whole T-step decode loop in ONE pallas_call.

    tokens:      (T,) int32 token indices
    last_hidden: (1, 1, H) initial hidden state (num_layers, batch, hidden)
    returns (log_probs (T, dict_size), hidden (1, 1, H))
    """
    emb, wg, bg, wo, bo = (packed["emb"], packed["wg"], packed["bg"],
                           packed["wo"], packed["bo"])
    V, _, Ep = emb.shape
    EHp, G4 = wg.shape
    Hp, Dp = wo.shape
    H = last_hidden.shape[-1]
    T = int(tokens.shape[0])

    tb = int(block_tokens)
    n_blocks = -(-T // tb)
    if n_blocks > 1 and tb % 8 != 0:
        raise ValueError("block_tokens must be a multiple of 8 (sublane tile) when T > block_tokens")
    Tpad = n_blocks * tb

    toks = tokens.astype(jnp.int32)
    if Tpad != T:
        toks = jnp.concatenate([toks, jnp.zeros((Tpad - T,), jnp.int32)])

    h0 = jnp.zeros((1, Hp), jnp.float32).at[:, :H].set(
        last_hidden.reshape(1, H).astype(jnp.float32))

    # Size scoped VMEM to the resident weights + I/O blocks (v5e default 16 MiB is too
    # small at realistic sizes); cap for v7x's 64 MiB physical VMEM.
    def _nbytes(a):
        return int(a.size) * a.dtype.itemsize
    resident = sum(_nbytes(a) for a in (emb, h0, wg, bg, wo, bo))
    vmem_limit = int(min(64 << 20,
                         max(8 << 20, 2 * resident + (tb * Dp + Hp) * 8 + (2 << 20))))

    grid_spec = pltpu.PrefetchScalarGridSpec(
        num_scalar_prefetch=1,                                    # token ids -> SMEM
        grid=(n_blocks,),
        in_specs=[
            pl.BlockSpec((V, 1, Ep), lambda b, tok: (0, 0, 0)),   # resident embedding table
            pl.BlockSpec((1, Hp), lambda b, tok: (0, 0)),         # h0
            pl.BlockSpec((EHp, G4), lambda b, tok: (0, 0)),       # stacked gate weights (resident)
            pl.BlockSpec((1, G4), lambda b, tok: (0, 0)),         # fused gate bias
            pl.BlockSpec((Hp, Dp), lambda b, tok: (0, 0)),        # output weights (resident)
            pl.BlockSpec((1, Dp), lambda b, tok: (0, 0)),         # output bias (pads = -1e30)
        ],
        out_specs=(
            pl.BlockSpec((tb, Dp), lambda b, tok: (b, 0)),        # per-block log-probs (dense tiles)
            pl.BlockSpec((1, Hp), lambda b, tok: (0, 0)),         # final hidden
        ),
        scratch_shapes=[pltpu.VMEM((1, Hp), jnp.float32)],        # hidden-state carry
    )

    logp_padded, h_last = pl.pallas_call(
        functools.partial(gru_decode_kernel, seq_len=T),
        grid_spec=grid_spec,
        out_shape=(
            jax.ShapeDtypeStruct((Tpad, Dp), jnp.float32),
            jax.ShapeDtypeStruct((1, Hp), jnp.float32),
        ),
        compiler_params=pltpu.CompilerParams(
            dimension_semantics=("arbitrary",),                   # recurrence: sequential blocks
            vmem_limit_bytes=vmem_limit),
    )(toks, emb, h0, wg, bg, wo, bo)

    log_probs = logp_padded[:T, :dict_size]      # strip time + vocab padding
    hidden = h_last[:, :H].reshape(1, 1, H)      # strip hidden-lane padding
    return log_probs, hidden


def gru_predictor_forward(packed, input_loc, last_hidden, *, dict_size):
    """Mirrors GRUPredictor.forward (single token, batch=1): returns ((1, D), (1, 1, H))."""
    tokens = jnp.reshape(input_loc, (1,)).astype(jnp.int32)
    return gru_decode(packed, tokens, last_hidden, dict_size=dict_size, block_tokens=1)


# ----------------------------- pure-JAX reference -----------------------------

def _bf16_weights(params):
    """Round weight matrices through bf16 to mirror the kernel's weight storage."""
    q = dict(params)
    for k in ("embedding", "w_ih_t", "w_hh_t", "w_out_t"):
        q[k] = params[k].astype(jnp.bfloat16).astype(jnp.float32)
    return q


def _reference_forward(params, input_loc, last_hidden):
    E = params["embedding"].shape[1]
    H = params["w_hh_t"].shape[0]
    x = params["embedding"][input_loc].reshape(1, E)
    h = last_hidden.reshape(1, H)

    gi = x @ params["w_ih_t"] + params["b_ih"]
    gh = h @ params["w_hh_t"] + params["b_hh"]
    i_r, i_z, i_n = gi[:, :H], gi[:, H:2 * H], gi[:, 2 * H:]
    h_r, h_z, h_n = gh[:, :H], gh[:, H:2 * H], gh[:, 2 * H:]
    r = jax.nn.sigmoid(i_r + h_r)
    z = jax.nn.sigmoid(i_z + h_z)
    n = jnp.tanh(i_n + r * h_n)
    h_new = (1.0 - z) * n + z * h

    # Mirror the kernel: the vocab projection consumes a bf16-rounded h (f32 accumulate).
    h_proj = h_new.astype(jnp.bfloat16).astype(jnp.float32)
    logits = h_proj @ params["w_out_t"] + params["b_out"]
    logp = jax.nn.log_softmax(logits, axis=-1)
    return logp, h_new.reshape(1, 1, H)


def _reference_decode(params, tokens, last_hidden):
    logps = []
    h = last_hidden
    for i in range(tokens.shape[0]):
        lp, h = _reference_forward(params, tokens[i], h)
        logps.append(lp[0])
    return jnp.stack(logps, axis=0), h


def init_params(key, embed_size, hidden_size, dict_size):
    ks = jax.random.split(key, 7)
    scale = 0.1
    return {
        # nn.Embedding(dict_size, embed_size)
        "embedding": scale * jax.random.normal(ks[0], (dict_size, embed_size), jnp.float32),
        # nn.GRU weight_ih_l0 (3H, E) -> transposed (E, 3H); gate order [r, z, n]
        "w_ih_t": scale * jax.random.normal(ks[1], (embed_size, 3 * hidden_size), jnp.float32),
        # weight_hh_l0 (3H, H) -> transposed (H, 3H)
        "w_hh_t": scale * jax.random.normal(ks[2], (hidden_size, 3 * hidden_size), jnp.float32),
        "b_ih": scale * jax.random.normal(ks[3], (1, 3 * hidden_size), jnp.float32),
        "b_hh": scale * jax.random.normal(ks[4], (1, 3 * hidden_size), jnp.float32),
        # nn.Linear(hidden_size, dict_size): weight (D, H) -> transposed (H, D)
        "w_out_t": scale * jax.random.normal(ks[5], (hidden_size, dict_size), jnp.float32),
        "b_out": scale * jax.random.normal(ks[6], (1, dict_size), jnp.float32),
    }


if __name__ == "__main__":
    embed_size, hidden_size, dict_size = 32, 32, 64
    seq_len = 16
    block_tokens = 8          # 2 time blocks -> exercises the cross-block hidden carry

    key = jax.random.PRNGKey(0)
    pkey, hkey, tkey = jax.random.split(key, 3)
    params = init_params(pkey, embed_size, hidden_size, dict_size)
    packed = pack_params(params)
    qparams = _bf16_weights(params)   # reference mirrors the kernel's bf16 weight storage

    last_hidden = 0.1 * jax.random.normal(hkey, (1, 1, hidden_size), jnp.float32)

    # ---- single-step forward (exact GRUPredictor.forward semantics) ----
    input_loc = jnp.int32(7)
    fwd = jax.jit(functools.partial(gru_predictor_forward, dict_size=dict_size))
    log_probs, hidden = fwd(packed, input_loc, last_hidden)
    jax.block_until_ready((log_probs, hidden))

    ref_logp, ref_hidden = _reference_forward(qparams, input_loc, last_hidden)
    assert log_probs.shape == (1, dict_size)
    assert hidden.shape == (1, 1, hidden_size)
    assert jnp.allclose(log_probs, ref_logp, atol=2e-3, rtol=2e-3)
    assert jnp.allclose(hidden, ref_hidden, atol=2e-3, rtol=2e-3)

    # ---- multi-token decode: the whole loop in ONE pallas_call ----
    tokens = jax.random.randint(tkey, (seq_len,), 0, dict_size, jnp.int32)
    dec = jax.jit(functools.partial(gru_decode, dict_size=dict_size,
                                    block_tokens=block_tokens))
    seq_logp, seq_hidden = dec(packed, tokens, last_hidden)
    jax.block_until_ready((seq_logp, seq_hidden))

    ref_seq_logp, ref_seq_hidden = _reference_decode(qparams, tokens, last_hidden)
    assert seq_logp.shape == (seq_len, dict_size)
    assert seq_hidden.shape == (1, 1, hidden_size)
    assert jnp.allclose(seq_logp, ref_seq_logp, atol=2e-3, rtol=2e-3)
    assert jnp.allclose(seq_hidden, ref_seq_hidden, atol=2e-3, rtol=2e-3)

    print("KERNEL_OK")
</pallas_src>

<mosaic_0001>
module attributes {stable_mosaic.version = 11 : i64} {
  func.func @gru_decode_kernel(%arg0: i32, %arg1: memref<1xi32, #tpu.memory_space<smem>>, %arg2: memref<64x1x128xbf16, #tpu.memory_space<vmem>>, %arg3: memref<1x128xf32, #tpu.memory_space<vmem>>, %arg4: memref<256x512xbf16, #tpu.memory_space<vmem>>, %arg5: memref<1x512xf32, #tpu.memory_space<vmem>>, %arg6: memref<128x128xbf16, #tpu.memory_space<vmem>>, %arg7: memref<1x128xf32, #tpu.memory_space<vmem>>, %arg8: memref<1x128xf32, #tpu.memory_space<vmem>>, %arg9: memref<1x128xf32, #tpu.memory_space<vmem>>, %arg10: memref<1x128xf32, #tpu.memory_space<vmem>>) attributes {dimension_semantics = [#tpu.dimension_semantics<arbitrary>], iteration_bounds = array<i64: 1>, scalar_prefetch = 1 : i64, scratch_operands = 1 : i64, tpu.core_type = #tpu.core_type<tc>, window_params = [{pipeline_mode = #tpu.pipeline_mode<synchronous>, transform_indices = @transform_0, window_bounds = array<i64: 64, 1, 128>}, {pipeline_mode = #tpu.pipeline_mode<synchronous>, transform_indices = @transform_1, window_bounds = array<i64: 1, 128>}, {pipeline_mode = #tpu.pipeline_mode<synchronous>, transform_indices = @transform_2, window_bounds = array<i64: 256, 512>}, {pipeline_mode = #tpu.pipeline_mode<synchronous>, transform_indices = @transform_3, window_bounds = array<i64: 1, 512>}, {pipeline_mode = #tpu.pipeline_mode<synchronous>, transform_indices = @transform_4, window_bounds = array<i64: 128, 128>}, {pipeline_mode = #tpu.pipeline_mode<synchronous>, transform_indices = @transform_5, window_bounds = array<i64: 1, 128>}, {transform_indices = @transform_6, window_bounds = array<i64: 1, 128>}, {pipeline_mode = #tpu.pipeline_mode<synchronous>, transform_indices = @transform_7, window_bounds = array<i64: 1, 128>}]} {
    %c0_i32 = arith.constant 0 : i32
    %0 = arith.cmpi eq, %arg0, %c0_i32 : i32
    %1 = arith.extui %0 : i1 to i32
    %c0_i32_0 = arith.constant 0 : i32
    %2 = arith.cmpi ne, %1, %c0_i32_0 : i32
    scf.if %2 {
      %c0_25 = arith.constant 0 : index
      %c0_26 = arith.constant 0 : index
      %60 = vector.load %arg3[%c0_25, %c0_26] : memref<1x128xf32, #tpu.memory_space<vmem>>, vector<1x128xf32>
      %c0_27 = arith.constant 0 : index
      %c0_28 = arith.constant 0 : index
      %61 = vector.load %arg10[%c0_27, %c0_28] : memref<1x128xf32, #tpu.memory_space<vmem>>, vector<1x128xf32>
      tpu.vector_store %arg10[%c0_27, %c0_28], %60 {strides = array<i32>} : memref<1x128xf32, #tpu.memory_space<vmem>>, vector<1x128xf32>,
    } else {
    }
    %c0 = arith.constant 0 : index
    %c0_1 = arith.constant 0 : index
    %3 = vector.load %arg4[%c0, %c0_1] : memref<256x512xbf16, #tpu.memory_space<vmem>>, vector<256x512xbf16>
    %4 = arith.extf %3 : vector<256x512xbf16> to vector<256x512xf32>
    %c0_2 = arith.constant 0 : index
    %c0_3 = arith.constant 0 : index
    %5 = vector.load %arg5[%c0_2, %c0_3] : memref<1x512xf32, #tpu.memory_space<vmem>>, vector<1x512xf32>
    %c0_4 = arith.constant 0 : index
    %c0_5 = arith.constant 0 : index
    %6 = vector.load %arg10[%c0_4, %c0_5] : memref<1x128xf32, #tpu.memory_space<vmem>>, vector<1x128xf32>
    %c1_i32 = arith.constant 1 : i32
    %7 = arith.muli %arg0, %c1_i32 : i32
    %c0_i32_6 = arith.constant 0 : i32
    %8 = arith.addi %7, %c0_i32_6 : i32
    %9 = arith.index_cast %8 : i32 to index
    %10 = memref.load %arg1[%9] : memref<1xi32, #tpu.memory_space<smem>>
    %11 = arith.index_cast %10 : i32 to index
    %c0_7 = arith.constant 0 : index
    %c0_8 = arith.constant 0 : index
    %12 = vector.load %arg2[%11, %c0_7, %c0_8] : memref<64x1x128xbf16, #tpu.memory_space<vmem>>, vector<1x1x128xbf16>
    %13 = vector.shape_cast %12 : vector<1x1x128xbf16> to vector<1x128xbf16>
    %14 = arith.extf %13 : vector<1x128xbf16> to vector<1x128xf32>
    %15 = tpu.concatenate %14, %6 in 1 : vector<1x128xf32>, vector<1x128xf32> -> vector<1x256xf32>
    %cst = arith.constant dense<0.000000e+00> : vector<1x512xf32>
    %16 = tpu.matmul %15, %4, %cst {dimension_numbers = #tpu.dot_dimension_numbers<[1], [0], [0], [1], [0, 0, 1, 1], [], []>} : vector<1x256xf32>, vector<256x512xf32>, vector<1x512xf32> -> vector<1x512xf32>
    %17 = arith.addf %16, %5 : vector<1x512xf32>
    %18 = vector.extract_strided_slice %17 {offsets = [0, 0], sizes = [1, 128], strides = [1, 1]} : vector<1x512xf32> to vector<1x128xf32>
    %19 = arith.negf %18 : vector<1x128xf32>
    %20 = math.exp %19 : vector<1x128xf32>
    %cst_9 = arith.constant 1.000000e+00 : f32
    %21 = vector.broadcast %cst_9 : f32 to vector<1x128xf32>
    %22 = arith.addf %21, %20 : vector<1x128xf32>
    %23 = arith.divf %21, %22 : vector<1x128xf32>
    %24 = vector.extract_strided_slice %17 {offsets = [0, 128], sizes = [1, 128], strides = [1, 1]} : vector<1x512xf32> to vector<1x128xf32>
    %25 = arith.negf %24 : vector<1x128xf32>
    %26 = math.exp %25 : vector<1x128xf32>
    %cst_10 = arith.constant 1.000000e+00 : f32
    %27 = vector.broadcast %cst_10 : f32 to vector<1x128xf32>
    %28 = arith.addf %27, %26 : vector<1x128xf32>
    %29 = arith.divf %27, %28 : vector<1x128xf32>
    %30 = vector.extract_strided_slice %17 {offsets = [0, 256], sizes = [1, 128], strides = [1, 1]} : vector<1x512xf32> to vector<1x128xf32>
    %31 = vector.extract_strided_slice %17 {offsets = [0, 384], sizes = [1, 128], strides = [1, 1]} : vector<1x512xf32> to vector<1x128xf32>
    %32 = arith.mulf %23, %31 : vector<1x128xf32>
    %33 = arith.addf %30, %32 : vector<1x128xf32>
    %34 = math.tanh %33 : vector<1x128xf32>
    %cst_11 = arith.constant 1.000000e+00 : f32
    %35 = vector.broadcast %cst_11 : f32 to vector<1x128xf32>
    %36 = arith.subf %35, %29 : vector<1x128xf32>
    %37 = arith.mulf %36, %34 : vector<1x128xf32>
    %38 = arith.mulf %29, %6 : vector<1x128xf32>
    %39 = arith.addf %37, %38 : vector<1x128xf32>
    %c0_12 = arith.constant 0 : index
    %c0_13 = arith.constant 0 : index
    %40 = vector.load %arg10[%c0_12, %c0_13] : memref<1x128xf32, #tpu.memory_space<vmem>>, vector<1x128xf32>
    tpu.vector_store %arg10[%c0_12, %c0_13], %39 {strides = array<i32>} : memref<1x128xf32, #tpu.memory_space<vmem>>, vector<1x128xf32>,
    %c0_i32_14 = arith.constant 0 : i32
    %41 = arith.cmpi eq, %arg0, %c0_i32_14 : i32
    %42 = arith.extui %41 : i1 to i32
    %c0_i32_15 = arith.constant 0 : i32
    %43 = arith.cmpi ne, %42, %c0_i32_15 : i32
    scf.if %43 {
      %c0_25 = arith.constant 0 : index
      %c0_26 = arith.constant 0 : index
      %60 = vector.load %arg9[%c0_25, %c0_26] : memref<1x128xf32, #tpu.memory_space<vmem>>, vector<1x128xf32>
      tpu.vector_store %arg9[%c0_25, %c0_26], %39 {strides = array<i32>} : memref<1x128xf32, #tpu.memory_space<vmem>>, vector<1x128xf32>,
    } else {
    }
    %44 = arith.truncf %39 : vector<1x128xf32> to vector<1x128xbf16>
    %c0_16 = arith.constant 0 : index
    %c0_17 = arith.constant 0 : index
    %45 = vector.load %arg6[%c0_16, %c0_17] : memref<128x128xbf16, #tpu.memory_space<vmem>>, vector<128x128xbf16>
    %cst_18 = arith.constant dense<0.000000e+00> : vector<1x128xf32>
    %46 = tpu.matmul %44, %45, %cst_18 {dimension_numbers = #tpu.dot_dimension_numbers<[1], [0], [0], [1], [0, 0, 1, 1], [], []>} : vector<1x128xbf16>, vector<128x128xbf16>, vector<1x128xf32> -> vector<1x128xf32>
    %c0_19 = arith.constant 0 : index
    %c0_20 = arith.constant 0 : index
    %47 = vector.load %arg7[%c0_19, %c0_20] : memref<1x128xf32, #tpu.memory_space<vmem>>, vector<1x128xf32>
    %48 = arith.addf %46, %47 : vector<1x128xf32>
    %cst_21 = arith.constant dense<0xFF800000> : vector<1xf32>
    %49 = vector.multi_reduction <maximumf>, %48, %cst_21 [1] : vector<1x128xf32> to vector<1xf32>
    %50 = vector.shape_cast %49 : vector<1xf32> to vector<1x1xf32>
    %51 = vector.broadcast %50 : vector<1x1xf32> to vector<1x128xf32>
    %52 = arith.subf %48, %51 : vector<1x128xf32>
    %53 = math.exp %52 : vector<1x128xf32>
    %cst_22 = arith.constant dense<0.000000e+00> : vector<1xf32>
    %54 = vector.multi_reduction <add>, %53, %cst_22 [1] : vector<1x128xf32> to vector<1xf32>
    %55 = vector.shape_cast %54 : vector<1xf32> to vector<1x1xf32>
    %56 = math.log %55 : vector<1x1xf32>
    %57 = vector.broadcast %56 : vector<1x1xf32> to vector<1x128xf32>
    %58 = arith.subf %52, %57 : vector<1x128xf32>
    %c0_23 = arith.constant 0 : index
    %c0_24 = arith.constant 0 : index
    %59 = vector.load %arg8[%c0_23, %c0_24] : memref<1x128xf32, #tpu.memory_space<vmem>>, vector<1x128xf32>
    tpu.vector_store %arg8[%c0_23, %c0_24], %58 {strides = array<i32>} : memref<1x128xf32, #tpu.memory_space<vmem>>, vector<1x128xf32>,
    return
  }
  func.func @transform_0(%arg0: i32, %arg1: memref<1xi32, #tpu.memory_space<smem>>) -> (i32, i32, i32) {
    %c0_i32 = arith.constant 0 : i32
    %c0_i32_0 = arith.constant 0 : i32
    %c0_i32_1 = arith.constant 0 : i32
    %c0_i32_2 = arith.constant 0 : i32
    return %c0_i32, %c0_i32_0, %c0_i32_1 : i32, i32, i32
  }
  func.func @transform_1(%arg0: i32, %arg1: memref<1xi32, #tpu.memory_space<smem>>) -> (i32, i32) {
    %c0_i32 = arith.constant 0 : i32
    %c0_i32_0 = arith.constant 0 : i32
    %c0_i32_1 = arith.constant 0 : i32
    return %c0_i32, %c0_i32_0 : i32, i32
  }
  func.func @transform_2(%arg0: i32, %arg1: memref<1xi32, #tpu.memory_space<smem>>) -> (i32, i32) {
    %c0_i32 = arith.constant 0 : i32
    %c0_i32_0 = arith.constant 0 : i32
    %c0_i32_1 = arith.constant 0 : i32
    return %c0_i32, %c0_i32_0 : i32, i32
  }
  func.func @transform_3(%arg0: i32, %arg1: memref<1xi32, #tpu.memory_space<smem>>) -> (i32, i32) {
    %c0_i32 = arith.constant 0 : i32
    %c0_i32_0 = arith.constant 0 : i32
    %c0_i32_1 = arith.constant 0 : i32
    return %c0_i32, %c0_i32_0 : i32, i32
  }
  func.func @transform_4(%arg0: i32, %arg1: memref<1xi32, #tpu.memory_space<smem>>) -> (i32, i32) {
    %c0_i32 = arith.constant 0 : i32
    %c0_i32_0 = arith.constant 0 : i32
    %c0_i32_1 = arith.constant 0 : i32
    return %c0_i32, %c0_i32_0 : i32, i32
  }
  func.func @transform_5(%arg0: i32, %arg1: memref<1xi32, #tpu.memory_space<smem>>) -> (i32, i32) {
    %c0_i32 = arith.constant 0 : i32
    %c0_i32_0 = arith.constant 0 : i32
    %c0_i32_1 = arith.constant 0 : i32
    return %c0_i32, %c0_i32_0 : i32, i32
  }
  func.func @transform_6(%arg0: i32, %arg1: memref<1xi32, #tpu.memory_space<smem>>) -> (i32, i32) {
    %c0_i32 = arith.constant 0 : i32
    %c0_i32_0 = arith.constant 0 : i32
    return %arg0, %c0_i32 : i32, i32
  }
  func.func @transform_7(%arg0: i32, %arg1: memref<1xi32, #tpu.memory_space<smem>>) -> (i32, i32) {
    %c0_i32 = arith.constant 0 : i32
    %c0_i32_0 = arith.constant 0 : i32
    %c0_i32_1 = arith.constant 0 : i32
    return %c0_i32, %c0_i32_0 : i32, i32
  }
}

</mosaic_0001>

<bundles_post_ra>
// kernel: gru_predictor_forward.1
= control target key start
LH: loop header
LB: loop body
LE: loop exit
PB: predicated region body
PF: predicated region fallthrough
CT: control target
= control target key end

     0   :  { %15 = vsyncpa [#allocation6], 0  ;;  %s1099_s0 = inlined_call_operand.<no memory space> [shape: s32[1], index: 0, kind: input, shape index: {}]   ;;  %s1100_s1 = inlined_call_operand.vmem [shape: bf16[64,1,128], index: 1, kind: input, shape index: {}]   ;;  %s1101_s2 = inlined_call_operand.vmem [shape: f32[1,128], index: 2, kind: input, shape index: {}]   ;;  %s1102_s3 = inlined_call_operand.hbm [shape: bf16[256,512], index: 3, kind: input, shape index: {}]   ;;  %s1103_s4 = inlined_call_operand.vmem [shape: f32[1,512], index: 4, kind: input, shape index: {}]   ;;  %s1104_s5 = inlined_call_operand.vmem [shape: bf16[128,128], index: 5, kind: input, shape index: {}]   ;;  %s1105_s6 = inlined_call_operand.vmem [shape: f32[1,128], index: 6, kind: input, shape index: {}]   ;;  %s1106_s7 = inlined_call_operand.hbm [shape: f32[1,128], index: 7, kind: output, shape index: {0}]   ;;  %s1107_s8 = inlined_call_operand.vmem [shape: f32[1,128], index: 8, kind: output, shape index: {1}]  }
   0x1   :  { %16 = vsyncpa [#allocation7], 0  ;;  %s977_s27 = smov [#allocation5]   ;;  %s929_s9 = scalar_lea.hbm %s1102_s3, 8192 }
   0x2   :  { %s26_s28 = sshll.u32 %s977_s27, 4  ;;  %p930_p0 = scmp.ne.s32.totalorder %s1102_s3, %s929_s9  ;;  %s27_s28 = int_to_ptr.vmem [resolvable:$true] %s26_s28 }
   0x3   :  { %p933_p1 = scmp.lt.u32.totalorder %s929_s9, %s1102_s3 }
   0x5   :  { %p935_p2 = pnand %p933_p1, %p930_p0 }
   0x7   :  { %938 = shalt.err (!%p935_p2)
}
   0x8   :  { %s939_s14 = scalar_lea.vmem %s27_s28, 8192  ;;  %p944_p4 = scmp.lt.s32.totalorder %s27_s28, %s27_s28 }
   0x9   :  { %p940_p3 = scmp.ne.s32.totalorder %s27_s28, %s939_s14  ;;  %p945_p5 = scmp.lt.s32.totalorder %s939_s14, %s939_s14 }
   0xb   :  { %p946_p6 = por %p945_p5, %p944_p4 }
   0xd   :  { %p947_p7 = pnand %p946_p6, %p940_p3 }
   0xf   :  { %950 = shalt.err (!%p947_p7)
}
  0x10   :  { %s978_s15 = smov 256   ;;  %s979_s16 = smov 16  }
  0x11   :  { %32 = dma.hbm_to_vmem [thread:$0]  %s1102_s3, 8192, %s27_s28, [#allocation6], %s978_s15, %s978_s15, %s979_s16  }
  0x12   :  { %973 = dma.done.wait [#allocation6], 8192  }
  0x13   :  { %974 = vsyncadd [#allocation6], 4294959104  ;;  %v811_v0 = vld [vmem:[#allocation5 + $0x4] ss:$16 sps:$4 sm:$0xff]   ;;  %v813_v1 = vld [vmem:[#allocation5] ss:$16 sps:$4 sm:$0xff]   ;;  %s244_s23 = scalar_lea.vmem %s1100_s1, %s1099_s0 }
  0x14   :  { %614 = vmatprep.subr.bf16.mxu0 %v811_v0  ;;  %v814_v2 = vld [vmem:[#allocation5 + $0x24] ss:$16 sps:$4 sm:$0xff]   ;;  %v816_v3 = vld [vmem:[#allocation5 + $0x20] ss:$16 sps:$4 sm:$0xff]   ;;  %v831_v7 = vld [vmem:[#allocation5 + $0xc] ss:$16 sps:$4 sm:$0xff]  }
  0x15   :  { %616 = vmatpush1.bf16.msra.mxu0 %v813_v1  ;;  %v817_v4 = vld [vmem:[#allocation5 + $0x44] ss:$16 sps:$4 sm:$0xff]   ;;  %v819_v5 = vld [vmem:[#allocation5 + $0x40] ss:$16 sps:$4 sm:$0xff]   ;;  %v834_v8 = vld [vmem:[#allocation5 + $0x8] ss:$16 sps:$4 sm:$0xff]   ;;  %678 = vmatprep.subr.bf16.mxu1 %v831_v7 }
  0x16   :  { %618 = vmatprep.subr.bf16.mxu0 %v814_v2  ;;  %v820_v6 = vld [vmem:[#allocation5 + $0x64] ss:$16 sps:$4 sm:$0xff]   ;;  %v822_v9 = vld [vmem:[#allocation5 + $0x60] ss:$16 sps:$4 sm:$0xff]   ;;  %680 = vmatpush1.bf16.msra.mxu1 %v834_v8  ;;  %v837_v11 = vld [vmem:[#allocation5 + $0x2c] ss:$16 sps:$4 sm:$0xff]  }
  0x17   :  { %v823_v10 = vld [vmem:[#allocation5 + $0x84] ss:$16 sps:$4 sm:$0xff]   ;;  %v840_v12 = vld [vmem:[#allocation5 + $0x28] ss:$16 sps:$4 sm:$0xff]   ;;  %682 = vmatprep.subr.bf16.mxu1 %v837_v11  ;;  %v825_v13 = vld [vmem:[#allocation5 + $0x80] ss:$16 sps:$4 sm:$0xff]  }
  0x18   :  { %v826_v14 = vld [vmem:[#allocation5 + $0xa4] ss:$16 sps:$4 sm:$0xff]   ;;  %v843_v15 = vld [vmem:[#allocation5 + $0x4c] ss:$16 sps:$4 sm:$0xff]   ;;  %v846_v16 = vld [vmem:[#allocation5 + $0x48] ss:$16 sps:$4 sm:$0xff]  }
  0x19   :  { %620 = vmatpush1.bf16.msra.mxu0 %v816_v3  ;;  %v849_v17 = vld [vmem:[#allocation5 + $0x6c] ss:$16 sps:$4 sm:$0xff]   ;;  %v828_v18 = vld [vmem:[#allocation5 + $0xa0] ss:$16 sps:$4 sm:$0xff]   ;;  %v829_v19 = vld [vmem:[#allocation5 + $0xc4] ss:$16 sps:$4 sm:$0xff]  }
  0x1a   :  { %622 = vmatprep.subr.bf16.mxu0 %v817_v4  ;;  %684 = vmatpush1.bf16.msra.mxu1 %v840_v12  ;;  %v852_v20 = vld [vmem:[#allocation5 + $0x68] ss:$16 sps:$4 sm:$0xff]   ;;  %v855_v21 = vld [vmem:[#allocation5 + $0x8c] ss:$16 sps:$4 sm:$0xff]   ;;  %v833_v22 = vld [vmem:[#allocation5 + $0xc0] ss:$16 sps:$4 sm:$0xff]  }
  0x1b   :  { %686 = vmatprep.subr.bf16.mxu1 %v843_v15  ;;  %v835_v23 = vld [vmem:[#allocation5 + $0xe4] ss:$16 sps:$4 sm:$0xff]   ;;  %v858_v24 = vld [vmem:[#allocation5 + $0x88] ss:$16 sps:$4 sm:$0xff]   ;;  %v861_v25 = vld [vmem:[#allocation5 + $0xac] ss:$16 sps:$4 sm:$0xff]  }
  0x1c   :  { %v839_v26 = vld [vmem:[#allocation5 + $0xe0] ss:$16 sps:$4 sm:$0xff]   ;;  %v841_v27 = vld [vmem:[#allocation5 + $0x104] ss:$16 sps:$4 sm:$0xff]   ;;  %v864_v28 = vld [vmem:[#allocation5 + $0xa8] ss:$16 sps:$4 sm:$0xff]  }
  0x1d   :  { %624 = vmatpush1.bf16.msra.mxu0 %v819_v5  ;;  %v867_v29 = vld [vmem:[#allocation5 + $0xcc] ss:$16 sps:$4 sm:$0xff]   ;;  %v845_v30 = vld [vmem:[#allocation5 + $0x100] ss:$16 sps:$4 sm:$0xff]   ;;  %v847_v31 = vld [vmem:[#allocation5 + $0x124] ss:$16 sps:$4 sm:$0xff]  }
  0x1e   :  { %626 = vmatprep.subr.bf16.mxu0 %v820_v6  ;;  %688 = vmatpush1.bf16.msra.mxu1 %v846_v16  ;;  %v870_v32 = vld [vmem:[#allocation5 + $0xc8] ss:$16 sps:$4 sm:$0xff]   ;;  %v873_v33 = vld [vmem:[#allocation5 + $0xec] ss:$16 sps:$4 sm:$0xff]   ;;  %v851_v35 = vld [vmem:[#allocation5 + $0x120] ss:$16 sps:$4 sm:$0xff]  }
  0x1f   :  { %690 = vmatprep.subr.bf16.mxu1 %v849_v17  ;;  %v47_v34 = vld [vmem:[%s1101_s2] sm:$0x1]  ;;  %v853_v36 = vld [vmem:[#allocation5 + $0x144] ss:$16 sps:$4 sm:$0xff]   ;;  %v876_v37 = vld [vmem:[#allocation5 + $0xe8] ss:$16 sps:$4 sm:$0xff]  }
  0x20   :  { %48 = vst [vmem:[#allocation2] sm:$0x1] %v47_v34  ;;  %v879_v38 = vld [vmem:[#allocation5 + $0x10c] ss:$16 sps:$4 sm:$0xff]   ;;  %v857_v39 = vld [vmem:[#allocation5 + $0x140] ss:$16 sps:$4 sm:$0xff]  }
  0x21   :  { %628 = vmatpush1.bf16.msra.mxu0 %v822_v9  ;;  %v859_v40 = vld [vmem:[#allocation5 + $0x164] ss:$16 sps:$4 sm:$0xff]   ;;  %v882_v41 = vld [vmem:[#allocation5 + $0x108] ss:$16 sps:$4 sm:$0xff]   ;;  %v863_v42 = vld [vmem:[#allocation5 + $0x160] ss:$16 sps:$4 sm:$0xff]  }
  0x22   :  { %630 = vmatprep.subr.bf16.mxu0 %v823_v10  ;;  %692 = vmatpush1.bf16.msra.mxu1 %v852_v20  ;;  %v885_v43 = vld [vmem:[#allocation5 + $0x12c] ss:$16 sps:$4 sm:$0xff]   ;;  %v865_v45 = vld [vmem:[#allocation5 + $0x184] ss:$16 sps:$4 sm:$0xff]   ;;  %v888_v46 = vld [vmem:[#allocation5 + $0x128] ss:$16 sps:$4 sm:$0xff]  }
  0x23   :  { %694 = vmatprep.subr.bf16.mxu1 %v855_v21  ;;  %v889_v47 = vld [vmem:[#allocation5 + $0x14c] ss:$16 sps:$4 sm:$0xff]   ;;  %v869_v48 = vld [vmem:[#allocation5 + $0x180] ss:$16 sps:$4 sm:$0xff]   ;;  %v871_v49 = vld [vmem:[#allocation5 + $0x1a4] ss:$16 sps:$4 sm:$0xff]  }
  0x24   :  { %v891_v50 = vld [vmem:[#allocation5 + $0x148] ss:$16 sps:$4 sm:$0xff]   ;;  %v892_v51 = vld [vmem:[#allocation5 + $0x16c] ss:$16 sps:$4 sm:$0xff]   ;;  %v875_v52 = vld [vmem:[#allocation5 + $0x1a0] ss:$16 sps:$4 sm:$0xff]  }
  0x25   :  { %632 = vmatpush1.bf16.msra.mxu0 %v825_v13  ;;  %v877_v53 = vld [vmem:[#allocation5 + $0x1c4] ss:$16 sps:$4 sm:$0xff]   ;;  %v894_v54 = vld [vmem:[#allocation5 + $0x168] ss:$16 sps:$4 sm:$0xff]   ;;  %v895_v55 = vld [vmem:[#allocation5 + $0x18c] ss:$16 sps:$4 sm:$0xff]   ;;  %v248_v13 = vlaneseq }
  0x26   :  { %634 = vmatprep.subr.bf16.mxu0 %v826_v14  ;;  %696 = vmatpush1.bf16.msra.mxu1 %v858_v24  ;;  %v881_v56 = vld [vmem:[#allocation5 + $0x1c0] ss:$16 sps:$4 sm:$0xff]   ;;  %v883_v57 = vld [vmem:[#allocation5 + $0x1e4] ss:$16 sps:$4 sm:$0xff]   ;;  %v897_v58 = vld [vmem:[#allocation5 + $0x188] ss:$16 sps:$4 sm:$0xff]  }
  0x27   :  { %698 = vmatprep.subr.bf16.mxu1 %v861_v25  ;;  %v1043_v44 = vld [vmem:[#allocation2] sm:$0x1]  ;;  %v887_v60 = vld [vmem:[#allocation5 + $0x1e0] ss:$16 sps:$4 sm:$0xff]   ;;  %v900_v62 = vld [vmem:[#allocation5 + $0x1a8] ss:$16 sps:$4 sm:$0xff]  }
  0x28   :  { %332 = vmatprep.mubr.f32.mxu0 %v1043_v44  ;;  %403 = vmatprep.mubr.f32.mxu1 %v1043_v44  ;;  %v898_v59 = vld [vmem:[#allocation5 + $0x1ac] ss:$16 sps:$4 sm:$0xff]   ;;  %v903_v1 = vld [vmem:[#allocation5 + $0x1c8] ss:$16 sps:$4 sm:$0xff]   ;;  %v980_v5 = vmov 0.0   ;;  %vm981_vm0 = vmmov 0  }
  0x29   :  { %636 = vmatpush1.bf16.msra.mxu0 %v828_v18  ;;  %v245_v61 = vld [vmem:[%s244_s23] sm:$0x1]  ;;  %v906_v3 = vld [vmem:[#allocation5 + $0x1e8] ss:$16 sps:$4 sm:$0xff]   ;;  %v909_v7 = vld [vmem:[%s1104_s5 + $0x10] sm:$0xff]   ;;  %v249_v14 = vshrl.u32 %v248_v13, 7 }
  0x2a   :  { %638 = vmatprep.subr.bf16.mxu0 %v829_v19  ;;  %700 = vmatpush1.bf16.msra.mxu1 %v864_v28  ;;  %v901_v63 = vld [vmem:[#allocation5 + $0x1cc] ss:$16 sps:$4 sm:$0xff]   ;;  %v246_v0 = vunpack.c.l.bf16 %v245_v61  ;;  %vm540_vm1 = vcmask 1040384  }
  0x2b   :  { %702 = vmatprep.subr.bf16.mxu1 %v867_v29  ;;  %v904_v2 = vld [vmem:[#allocation5 + $0x1ec] ss:$16 sps:$4 sm:$0xff]   ;;  %v250_v15 = vsub.s32 0, %v249_v14  ;;  %v254_v17 = vsub.s32 1, %v249_v14 }
  0x2c   :  { %v907_v4 = vld [vmem:[%s1104_s5] sm:$0xff]   ;;  %v908_v6 = vld [vmem:[%s1104_s5 + $0x8] sm:$0xff]   ;;  %v910_v8 = vld [vmem:[%s1104_s5 + $0x18] sm:$0xff]  }
  0x2d   :  { %640 = vmatpush1.bf16.msra.mxu0 %v833_v22  ;;  %v911_v9 = vld [vmem:[%s1104_s5 + $0x20] sm:$0xff]   ;;  %v912_v10 = vld [vmem:[%s1104_s5 + $0x28] sm:$0xff]   ;;  %v913_v11 = vld [vmem:[%s1104_s5 + $0x30] sm:$0xff]  }
  0x2e   :  { %642 = vmatprep.subr.bf16.mxu0 %v835_v23  ;;  %704 = vmatpush1.bf16.msra.mxu1 %v870_v32  ;;  %v914_v12 = vld [vmem:[%s1104_s5 + $0x38] sm:$0xff]   ;;  %v241_v16 = vld [vmem:[%s1103_s4] sm:$0xf] }
  0x2f   :  { %706 = vmatprep.subr.bf16.mxu1 %v873_v33  ;;  %v251_v18 = vrot.slane %v241_v16, %v250_v15  ;;  %v255_v20 = vrot.slane %v241_v16, %v254_v17 }
  0x31   :  { %644 = vmatpush1.bf16.msra.mxu0 %v839_v26 }
  0x32   :  { %646 = vmatprep.subr.bf16.mxu0 %v841_v27  ;;  %708 = vmatpush1.bf16.msra.mxu1 %v876_v37 }
  0x33   :  { %710 = vmatprep.subr.bf16.mxu1 %v879_v38 }
  0x35   :  { %648 = vmatpush1.bf16.msra.mxu0 %v845_v30  ;;  %v262_v30 = vsub.s32 3, %v249_v14 }
  0x36   :  { %650 = vmatprep.subr.bf16.mxu0 %v847_v31  ;;  %712 = vmatpush1.bf16.msra.mxu1 %v882_v41  ;;  %v258_v31 = vsub.s32 2, %v249_v14 }
  0x37   :  { %714 = vmatprep.subr.bf16.mxu1 %v885_v43  ;;  %v263_v32 = vrot.slane %v241_v16, %v262_v30 }
  0x39   :  { %652 = vmatpush1.bf16.msra.mxu0 %v851_v35  ;;  %v259_v35 = vrot.slane %v241_v16, %v258_v31 }
  0x3a   :  { %654 = vmatprep.subr.bf16.mxu0 %v853_v36  ;;  %716 = vmatpush1.bf16.msra.mxu1 %v888_v46 }
  0x3b   :  { %718 = vmatprep.subr.bf16.mxu1 %v889_v47 }
  0x3d   :  { %656 = vmatpush1.bf16.msra.mxu0 %v857_v39 }
  0x3e   :  { %658 = vmatprep.subr.bf16.mxu0 %v859_v40  ;;  %720 = vmatpush1.bf16.msra.mxu1 %v891_v50 }
  0x3f   :  { %722 = vmatprep.subr.bf16.mxu1 %v892_v51 }
  0x41   :  { %660 = vmatpush1.bf16.msra.mxu0 %v863_v42 }
  0x42   :  { %662 = vmatprep.subr.bf16.mxu0 %v865_v45  ;;  %724 = vmatpush1.bf16.msra.mxu1 %v894_v54 }
  0x43   :  { %726 = vmatprep.subr.bf16.mxu1 %v895_v55 }
  0x45   :  { %664 = vmatpush1.bf16.msra.mxu0 %v869_v48 }
  0x46   :  { %666 = vmatprep.subr.bf16.mxu0 %v871_v49  ;;  %728 = vmatpush1.bf16.msra.mxu1 %v897_v58  ;;  %v451_v49 = vld [vmem:[%s1105_s6] sm:$0x1] }
  0x47   :  { %730 = vmatprep.subr.bf16.mxu1 %v898_v59 }
  0x49   :  { %668 = vmatpush1.bf16.msra.mxu0 %v875_v52 }
  0x4a   :  { %670 = vmatprep.subr.bf16.mxu0 %v877_v53  ;;  %732 = vmatpush1.bf16.msra.mxu1 %v900_v62 }
  0x4b   :  { %734 = vmatprep.subr.bf16.mxu1 %v901_v63 }
  0x4d   :  { %672 = vmatpush1.bf16.msra.mxu0 %v881_v56 }
  0x4e   :  { %674 = vmatprep.subr.bf16.mxu0 %v883_v57  ;;  %736 = vmatpush1.bf16.msra.mxu1 %v903_v1 }
  0x4f   :  { %738 = vmatprep.subr.bf16.mxu1 %v904_v2 }
  0x51   :  { %676 = vmatpush1.bf16.msra.mxu0 %v887_v60 }
  0x52   :  { %740 = vmatpush1.bf16.msra.mxu1 %v906_v3  ;;  %593 = vmatprep.subr.bf16.mxu0 %v980_v5 }
  0x54   :  { %333 = vmatmul.mubr.f32.vlgmr.msra.gmra.mrb[0].mxu0 %v246_v0 }
  0x55   :  { %404 = vmatmul.mubr.f32.vlgmr.msra.gmra.mrb[0].mxu1 %v246_v0  ;;  %594 = vmatpush3.bf16.msra.mxu0 %v907_v4 }
  0x56   :  { %595 = vmatprep.subr.bf16.mxu0 %v980_v5  ;;  %609 = vmatprep.mubr.msk.bf16.mxu0 %vm981_vm0, %v980_v5 }
  0x59   :  { %596 = vmatpush3.bf16.msra.mxu0 %v908_v6 }
  0x5a   :  { %597 = vmatprep.subr.bf16.mxu0 %v980_v5 }
  0x5d   :  { %598 = vmatpush3.bf16.msra.mxu0 %v909_v7 }
  0x5e   :  { %599 = vmatprep.subr.bf16.mxu0 %v980_v5 }
  0x61   :  { %600 = vmatpush3.bf16.msra.mxu0 %v910_v8 }
  0x62   :  { %601 = vmatprep.subr.bf16.mxu0 %v980_v5 }
  0x65   :  { %602 = vmatpush3.bf16.msra.mxu0 %v911_v9 }
  0x66   :  { %603 = vmatprep.subr.bf16.mxu0 %v980_v5 }
  0x69   :  { %604 = vmatpush3.bf16.msra.mxu0 %v912_v10 }
  0x6a   :  { %605 = vmatprep.subr.bf16.mxu0 %v980_v5 }
  0x6d   :  { %606 = vmatpush3.bf16.msra.mxu0 %v913_v11 }
  0x6e   :  { %607 = vmatprep.subr.bf16.mxu0 %v980_v5 }
  0x71   :  { %608 = vmatpush3.bf16.msra.mxu0 %v914_v12 }
 0x127   :  { %v334_v19 = vpop.f32.mrb[0].mxu0 }
 0x128   :  { %v335_v21 = vadd.f32 %v334_v19, %v251_v18  ;;  %v336_v22 = vpop.f32.mrb[1].mxu0  ;;  %v405_v26 = vpop.f32.mrb[0].mxu1 }
 0x129   :  { %v337_v24 = vadd.f32 %v336_v22, %v255_v20  ;;  %v407_v27 = vpop.f32.mrb[1].mxu1  ;;  %v406_v38 = vadd.f32 %v405_v26, %v259_v35 }
 0x12a   :  { %v574_v23 = vmul.f32 -1.442695, %v335_v21  ;;  %v408_v36 = vadd.f32 %v407_v27, %v263_v32 }
 0x12b   :  { %v575_v25 = vmul.f32 -1.442695, %v337_v24 }
 0x12c   :  { %915 = vpow2.f32 %v574_v23 }
 0x12d   :  { %917 = vpow2.f32 %v575_v25 }
 0x136   :  { %v916_v28 = vpop.eup %915 }
 0x137   :  { %v413_v29 = vadd.f32 1.0, %v916_v28  ;;  %v918_v33 = vpop.eup %917 }
 0x138   :  { %v419_v34 = vadd.f32 1.0, %v918_v33 }
 0x139   :  { %919 = vrcp.f32 %v413_v29 }
 0x13a   :  { %921 = vrcp.f32 %v419_v34 }
 0x143   :  { %v920_v37 = vpop.eup %919 }
 0x144   :  { %v422_v39 = vmul.f32 %v920_v37, %v408_v36  ;;  %v922_v41 = vpop.eup %921 }
 0x145   :  { %v425_v42 = vsub.f32 1.0, %v922_v41  ;;  %v427_v46 = vmul.f32 %v922_v41, %v1043_v44 }
 0x146   :  { %v423_v40 = vadd.f32 %v422_v39, %v406_v38 }
 0x148   :  { %923 = vtanh.f32 %v423_v40 }
 0x152   :  { %v924_v43 = vpop.eup %923 }
 0x153   :  { %v426_v45 = vmul.f32 %v924_v43, %v425_v42 }
 0x155   :  { %v428_v47 = vadd.f32 %v427_v46, %v426_v45 }
 0x157   :  { %429 = vst [vmem:[#allocation2] sm:$0x1] %v428_v47  ;;  %433 = vst [vmem:[%s1107_s8] sm:$0x1] %v428_v47  ;;  %v434_v48 = vpack.c.bf16 %v428_v47, %v428_v47  ;;  %s982_s8 = smov [#allocation8]  }
 0x158   :  { %s560_s6 = sshll.u32 %s982_s8, 4  ;;  %s561_s6 = int_to_ptr.vmem [resolvable:$true] %s560_s6 }
 0x159   :  { %610 = vmatmul.mubr.bf16.vlgmr.msra.gmra.mrb[4].mxu0 %v434_v48  ;;  %s951_s19 = scalar_lea.vmem %s561_s6, 16  ;;  %s955_s2 = scalar_lea.vmem %s561_s6, 32 }
 0x15a   :  { %p952_p8 = scmp.ne.s32.totalorder %s561_s6, %s951_s19  ;;  %p956_p9 = scmp.lt.s32.totalorder %s561_s6, %s561_s6 }
 0x15b   :  { %p957_p10 = scmp.lt.s32.totalorder %s955_s2, %s951_s19 }
 0x15d   :  { %p958_p11 = por %p957_p10, %p956_p9 }
 0x15f   :  { %p959_p12 = pnand %p958_p11, %p952_p8 }
 0x22c   :  { %v534_v50 = vpop.f32.mrb[4].mxu0 }
 0x22d   :  { %v535_v51 = vadd.f32 %v534_v50, %v451_v49  ;;  %v611_v52 = vpop.f32.mrb[5].mxu0 }
 0x22e   :  { %v537_v53 = vpop.f32.mrb[6].mxu0 }
 0x22f   :  { %v612_v54 = vpop.f32.mrb[7].mxu0  ;;  %v541_v55 = vsel %vm540_vm1, %v535_v51, -inf }
 0x230   :  { %542 = vmax.xlane.f32.xlu0 %v541_v55 }
 0x2bd   :  { %v543_v44 = vpop.xlane.xlu0 %542 }
 0x2be   :  { %v544_v56 = vsub.f32 %v535_v51, %v543_v44 }
 0x2c0   :  { %v545_v57 = vmul.f32 1.442695, %v544_v56 }
 0x2c2   :  { %925 = vpow2.f32 %v545_v57 }
 0x2cc   :  { %v926_v58 = vpop.eup %925 }
 0x2cd   :  { %v547_v59 = vsel %vm540_vm1, %v926_v58, 0.0 }
 0x2ce   :  { %548 = vadd.xlane.f32.xlu0 %v547_v59 }
 0x35b   :  { %v549_v60 = vpop.xlane.xlu0 %548 }
 0x35c   :  { %927 = vlog2.f32 %v549_v60 }
 0x366   :  { %v928_v61 = vpop.eup %927 }
 0x367   :  { %v551_v62 = vmul.f32 0.6931472, %v928_v61 }
 0x369   :  { %v552_v63 = vsub.f32 %v544_v56, %v551_v62 }
 0x36b   :  { %553 = vst [vmem:[#allocation8] sm:$0x1] %v552_v63 }
 0x36c   :  { %962 = shalt.err (!%p959_p12)
}
 0x36d   :  { %s963_s22 = scalar_lea.hbm %s1106_s7, 16 }
 0x36e   :  { %p964_p13 = scmp.ne.s32.totalorder %s1106_s7, %s963_s22  ;;  %p967_p0 = scmp.lt.u32.totalorder %s963_s22, %s1106_s7 }
 0x370   :  { %p969_p1 = pnand %p967_p0, %p964_p13 }
 0x372   :  { %972 = shalt.err (!%p969_p1)
}
 0x373   :  { %563 = dma.vmem_to_hbm [thread:$0]  %s561_s6, 16, %s1106_s7, [#allocation7]  }
 0x374   :  { %975 = dma.done.wait [#allocation7], 16  }
 0x375   :  { %976 = vsyncadd [#allocation7], 4294967280 }
 0x376   :  { %571 = vsyncpa [#allocation6], 1 }
 0x377   :  { %572 = vsyncpa [#allocation7], 1 }

</bundles_post_ra>
